<compile_context>
chip_gen: v6e
topology: v6e:2x2x1
jax: 0.10.0
libtpu: 0.0.40
codegen_flags: <defaults>
</compile_context>

<pallas_src>
import functools

import jax
import jax.numpy as jnp
from jax import lax
from jax.experimental import pallas as pl
from jax.experimental.pallas import tpu as pltpu

_LANES = 128


def _stats_kernel(x_ref, e_ref, m_ref, sum_acc, cnt_acc, max_acc, *, total):
    """Accumulate sum(|x|), count(non-NaN), max(|tanh(x)|) across the grid."""
    i = pl.program_id(0)

    @pl.when(i == 0)
    def _init():
        sum_acc[...] = jnp.zeros_like(sum_acc)
        cnt_acc[...] = jnp.zeros_like(cnt_acc)
        max_acc[...] = jnp.zeros_like(max_acc)   # |tanh| >= 0, so 0 is a safe identity

    x = x_ref[...].astype(jnp.float32)
    br, lanes = x.shape
    row = lax.broadcasted_iota(jnp.int32, (br, lanes), 0)
    col = lax.broadcasted_iota(jnp.int32, (br, lanes), 1)
    gidx = (i * br + row) * lanes + col
    # Mask out (a) lane-padding zeros, (b) garbage rows of a partial last block,
    # and (c) NaNs (torch.nanmean semantics).
    valid = (gidx < total) & (x == x)

    sum_acc[...] += jnp.sum(jnp.where(valid, jnp.abs(x), 0.0))
    cnt_acc[...] += jnp.sum(valid.astype(jnp.float32))
    max_acc[...] = jnp.maximum(
        max_acc[...], jnp.max(jnp.where(valid, jnp.abs(jnp.tanh(x)), 0.0)))

    @pl.when(i == pl.num_programs(0) - 1)
    def _finish():
        e_ref[...] = sum_acc[...] / cnt_acc[...]   # E = nanmean(|x|)
        m_ref[...] = max_acc[...]                  # M = max(|tanh(x)|)


def _quant_kernel(e_ref, m_ref, x_ref, o_ref, *, w_bit):
    x = x_ref[...].astype(jnp.float32)
    e = e_ref[...]          # (1, 1), broadcast over the block
    m = m_ref[...]          # (1, 1)
    w = jnp.tanh(x)
    if w_bit == 32:
        wn = jnp.where(w == 0.0, w, w / m)          # `where` guards max==0, as in PyTorch
        y = wn * e
    else:
        # w*0.5 is bit-identical to w/2; the single divide by the broadcast M is
        # kept (not folded to a reciprocal multiply) so results match the
        # division-ordered reference exactly — the kernel is HBM-bound, so the
        # divide hides under DMA anyway.
        wn = jnp.where(w == 0.0, w + 0.5, (w * 0.5) / m + 0.5)
        n = float(2 ** w_bit - 1)
        q = jnp.round(wn * n) / n                    # qfn: where(r==0, r, r/n) == r/n
        y = (2.0 * q - 1.0) * e
    o_ref[...] = y.astype(o_ref.dtype)


def weight_quantize(x, w_bit: int = 4, *, block_rows: int = 1024):
    """Pallas equivalent of weight_quantize_fn(w_bit).forward(x). Shape-preserving."""
    orig_shape = x.shape
    orig_dtype = x.dtype
    total = int(x.size)

    x_flat = jnp.reshape(x, (-1,))
    pad = (-total) % _LANES
    if pad:
        # Only the <128-element lane remainder is padded; no full block-multiple
        # padding (partial row-blocks are masked in-kernel / clipped by Pallas).
        x_flat = jnp.pad(x_flat, (0, pad))
    rows = (total + pad) // _LANES
    x2d = jnp.reshape(x_flat, (rows, _LANES))

    # (block_rows, 128) f32 = 512 KiB default -> ~2 MiB double-buffered in+out,
    # well under the scoped-VMEM defaults of v5e (16 MiB) / v6e / v7x (32 MiB).
    if rows > block_rows:
        br = block_rows            # multiple of 8 -> satisfies (8, 128) tiling
    else:
        br = rows                  # single block equal to full array dims
    grid = (pl.cdiv(rows, br),)

    scalar_shape = jax.ShapeDtypeStruct((1, 1), jnp.float32)
    scalar_spec = pl.BlockSpec((1, 1), lambda i: (0, 0))
    x_spec = pl.BlockSpec((br, _LANES), lambda i: (i, 0))

    # Pass 1: global statistics (sequential accumulation -> "arbitrary").
    e, m = pl.pallas_call(
        functools.partial(_stats_kernel, total=total),
        out_shape=(scalar_shape, scalar_shape),
        grid_spec=pltpu.PrefetchScalarGridSpec(
            num_scalar_prefetch=0,
            grid=grid,
            in_specs=[x_spec],
            out_specs=(scalar_spec, scalar_spec),
            scratch_shapes=[pltpu.VMEM((1, 1), jnp.float32)] * 3,
        ),
        compiler_params=pltpu.CompilerParams(
            dimension_semantics=("arbitrary",)),
    )(x2d)

    # Pass 2: elementwise quantization (independent blocks -> "parallel").
    y2d = pl.pallas_call(
        functools.partial(_quant_kernel, w_bit=w_bit),
        out_shape=jax.ShapeDtypeStruct((rows, _LANES), orig_dtype),
        grid_spec=pltpu.PrefetchScalarGridSpec(
            num_scalar_prefetch=0,
            grid=grid,
            in_specs=[scalar_spec, scalar_spec, x_spec],
            out_specs=x_spec,
        ),
        compiler_params=pltpu.CompilerParams(
            dimension_semantics=("parallel",)),
    )(e, m, x2d)

    y_flat = jnp.reshape(y2d, (-1,))
    if pad:
        y_flat = y_flat[:total]
    return jnp.reshape(y_flat, orig_shape)


def _reference(x, w_bit):
    """Pure-JAX mirror of the PyTorch module's forward (for sanity checking)."""
    x = x.astype(jnp.float32)
    e = jnp.nanmean(jnp.abs(x))
    w = jnp.tanh(x)
    m = jnp.max(jnp.abs(w))
    if w_bit == 32:
        wn = jnp.where(w == 0.0, w, w / m)
        return wn * e
    wn = jnp.where(w == 0.0, w + 0.5, w / 2.0 / m + 0.5)
    n = float(2 ** w_bit - 1)
    r = jnp.round(wn * n)
    q = jnp.where(r == 0.0, r, r / n)
    return (2.0 * q - 1.0) * e


def _check_quant(y, ref, x, w_bit):
    err = jnp.abs(y - ref)
    n = float(2 ** w_bit - 1)
    step = 2.0 * float(jnp.nanmean(jnp.abs(x))) / n
    # Nearly all elements must agree tightly; a handful of single-quantization-step
    # differences are tolerated (they can only arise when round() lands exactly on
    # a half-integer boundary and the in-kernel tanh differs from XLA's by an ulp).
    n_mismatch = int(jnp.sum(err > 1e-5))
    assert n_mismatch <= max(2, err.size // 500), f"too many mismatches: {n_mismatch}"
    assert float(jnp.max(err)) <= step + 1e-5, float(jnp.max(err))


if __name__ == "__main__":
    key = jax.random.PRNGKey(0)
    k1, k2 = jax.random.split(key)

    # conv-like weight tensor: (out_ch=16, in_ch=8, kh=3, kw=3) -> 1152 elements
    w = jax.random.normal(k1, (16, 8, 3, 3), dtype=jnp.float32)

    # 4-bit quantization path
    y4 = jax.block_until_ready(weight_quantize(w, w_bit=4))
    _check_quant(y4, _reference(w, 4), w, 4)

    # full-precision (w_bit == 32) path
    y32 = jax.block_until_ready(weight_quantize(w, w_bit=32))
    assert float(jnp.max(jnp.abs(y32 - _reference(w, 32)))) < 1e-5

    # non-multiple-of-128 element count exercises the lane-pad + masking path
    w_odd = jax.random.normal(k2, (10, 3, 3, 3), dtype=jnp.float32)   # 270 elements
    y_odd = jax.block_until_ready(weight_quantize(w_odd, w_bit=4))
    _check_quant(y_odd, _reference(w_odd, 4), w_odd, 4)

    print("KERNEL_OK")
</pallas_src>

<mosaic_0001>
module attributes {stable_mosaic.version = 11 : i64} {
  func.func @_stats_kernel(%arg0: i32, %arg1: memref<9x128xf32, #tpu.memory_space<vmem>>, %arg2: memref<1x1xf32, #tpu.memory_space<vmem>>, %arg3: memref<1x1xf32, #tpu.memory_space<vmem>>, %arg4: memref<1x1xf32, #tpu.memory_space<vmem>>, %arg5: memref<1x1xf32, #tpu.memory_space<vmem>>, %arg6: memref<1x1xf32, #tpu.memory_space<vmem>>) attributes {dimension_semantics = [#tpu.dimension_semantics<arbitrary>], iteration_bounds = array<i64: 1>, scalar_prefetch = 0 : i64, scratch_operands = 3 : i64, tpu.core_type = #tpu.core_type<tc>, window_params = [{transform_indices = @transform_0, window_bounds = array<i64: 9, 128>}, {pipeline_mode = #tpu.pipeline_mode<synchronous>, transform_indices = @transform_1, window_bounds = array<i64: 1, 1>}, {pipeline_mode = #tpu.pipeline_mode<synchronous>, transform_indices = @transform_2, window_bounds = array<i64: 1, 1>}]} {
    %c0_i32 = arith.constant 0 : i32
    %0 = arith.cmpi eq, %arg0, %c0_i32 : i32
    %1 = arith.extui %0 : i1 to i32
    %c0_i32_0 = arith.constant 0 : i32
    %2 = arith.cmpi ne, %1, %c0_i32_0 : i32
    scf.if %2 {
      %cst_20 = arith.constant 0.000000e+00 : f32
      %52 = vector.broadcast %cst_20 : f32 to vector<1x1xf32>
      %c0_21 = arith.constant 0 : index
      %c0_22 = arith.constant 0 : index
      %53 = vector.load %arg4[%c0_21, %c0_22] : memref<1x1xf32, #tpu.memory_space<vmem>>, vector<1x1xf32>
      tpu.vector_store %arg4[%c0_21, %c0_22], %52 {strides = array<i32>} : memref<1x1xf32, #tpu.memory_space<vmem>>, vector<1x1xf32>,
      %cst_23 = arith.constant 0.000000e+00 : f32
      %54 = vector.broadcast %cst_23 : f32 to vector<1x1xf32>
      %c0_24 = arith.constant 0 : index
      %c0_25 = arith.constant 0 : index
      %55 = vector.load %arg5[%c0_24, %c0_25] : memref<1x1xf32, #tpu.memory_space<vmem>>, vector<1x1xf32>
      tpu.vector_store %arg5[%c0_24, %c0_25], %54 {strides = array<i32>} : memref<1x1xf32, #tpu.memory_space<vmem>>, vector<1x1xf32>,
      %cst_26 = arith.constant 0.000000e+00 : f32
      %56 = vector.broadcast %cst_26 : f32 to vector<1x1xf32>
      %c0_27 = arith.constant 0 : index
      %c0_28 = arith.constant 0 : index
      %57 = vector.load %arg6[%c0_27, %c0_28] : memref<1x1xf32, #tpu.memory_space<vmem>>, vector<1x1xf32>
      tpu.vector_store %arg6[%c0_27, %c0_28], %56 {strides = array<i32>} : memref<1x1xf32, #tpu.memory_space<vmem>>, vector<1x1xf32>,
    } else {
    }
    %c0 = arith.constant 0 : index
    %c0_1 = arith.constant 0 : index
    %3 = vector.load %arg1[%c0, %c0_1] : memref<9x128xf32, #tpu.memory_space<vmem>>, vector<9x128xf32>
    %4 = tpu.iota {dimensions = array<i32: 0>} : vector<9x128xi32>
    %5 = tpu.iota {dimensions = array<i32: 1>} : vector<9x128xi32>
    %c9_i32 = arith.constant 9 : i32
    %6 = arith.muli %arg0, %c9_i32 : i32
    %7 = vector.broadcast %6 : i32 to vector<9x128xi32>
    %8 = arith.addi %7, %4 : vector<9x128xi32>
    %c128_i32 = arith.constant 128 : i32
    %9 = vector.broadcast %c128_i32 : i32 to vector<9x128xi32>
    %10 = arith.muli %8, %9 : vector<9x128xi32>
    %11 = arith.addi %10, %5 : vector<9x128xi32>
    %c1152_i32 = arith.constant 1152 : i32
    %12 = vector.broadcast %c1152_i32 : i32 to vector<9x128xi32>
    %13 = arith.cmpi slt, %11, %12 : vector<9x128xi32>
    %14 = arith.cmpf oeq, %3, %3 : vector<9x128xf32>
    %15 = arith.andi %13, %14 : vector<9x128xi1>
    %c0_2 = arith.constant 0 : index
    %c0_3 = arith.constant 0 : index
    %16 = vector.load %arg4[%c0_2, %c0_3] : memref<1x1xf32, #tpu.memory_space<vmem>>, vector<1x1xf32>
    %17 = math.absf %3 : vector<9x128xf32>
    %cst = arith.constant 0.000000e+00 : f32
    %18 = vector.broadcast %cst : f32 to vector<9x128xf32>
    %19 = arith.select %15, %17, %18 : vector<9x128xi1>, vector<9x128xf32>
    %20 = vector.shape_cast %19 : vector<9x128xf32> to vector<1x9x128xf32>
    %cst_4 = arith.constant dense<0.000000e+00> : vector<1xf32>
    %21 = vector.multi_reduction <add>, %20, %cst_4 [1, 2] : vector<1x9x128xf32> to vector<1xf32>
    %22 = vector.shape_cast %21 : vector<1xf32> to vector<1x1x1xf32>
    %23 = vector.extract %22[0, 0, 0] : f32 from vector<1x1x1xf32>
    %24 = vector.broadcast %23 : f32 to vector<1x1xf32>
    %25 = arith.addf %16, %24 : vector<1x1xf32>
    %c0_5 = arith.constant 0 : index
    %c0_6 = arith.constant 0 : index
    %26 = vector.load %arg4[%c0_5, %c0_6] : memref<1x1xf32, #tpu.memory_space<vmem>>, vector<1x1xf32>
    tpu.vector_store %arg4[%c0_5, %c0_6], %25 {strides = array<i32>} : memref<1x1xf32, #tpu.memory_space<vmem>>, vector<1x1xf32>,
    %c0_7 = arith.constant 0 : index
    %c0_8 = arith.constant 0 : index
    %27 = vector.load %arg5[%c0_7, %c0_8] : memref<1x1xf32, #tpu.memory_space<vmem>>, vector<1x1xf32>
    %28 = arith.extui %15 : vector<9x128xi1> to vector<9x128xi32>
    %29 = arith.sitofp %28 : vector<9x128xi32> to vector<9x128xf32>
    %30 = vector.shape_cast %29 : vector<9x128xf32> to vector<1x9x128xf32>
    %cst_9 = arith.constant dense<0.000000e+00> : vector<1xf32>
    %31 = vector.multi_reduction <add>, %30, %cst_9 [1, 2] : vector<1x9x128xf32> to vector<1xf32>
    %32 = vector.shape_cast %31 : vector<1xf32> to vector<1x1x1xf32>
    %33 = vector.extract %32[0, 0, 0] : f32 from vector<1x1x1xf32>
    %34 = vector.broadcast %33 : f32 to vector<1x1xf32>
    %35 = arith.addf %27, %34 : vector<1x1xf32>
    %c0_10 = arith.constant 0 : index
    %c0_11 = arith.constant 0 : index
    %36 = vector.load %arg5[%c0_10, %c0_11] : memref<1x1xf32, #tpu.memory_space<vmem>>, vector<1x1xf32>
    tpu.vector_store %arg5[%c0_10, %c0_11], %35 {strides = array<i32>} : memref<1x1xf32, #tpu.memory_space<vmem>>, vector<1x1xf32>,
    %c0_12 = arith.constant 0 : index
    %c0_13 = arith.constant 0 : index
    %37 = vector.load %arg6[%c0_12, %c0_13] : memref<1x1xf32, #tpu.memory_space<vmem>>, vector<1x1xf32>
    %38 = math.tanh %3 : vector<9x128xf32>
    %39 = math.absf %38 : vector<9x128xf32>
    %cst_14 = arith.constant 0.000000e+00 : f32
    %40 = vector.broadcast %cst_14 : f32 to vector<9x128xf32>
    %41 = arith.select %15, %39, %40 : vector<9x128xi1>, vector<9x128xf32>
    %42 = vector.shape_cast %41 : vector<9x128xf32> to vector<1x9x128xf32>
    %cst_15 = arith.constant dense<0xFF800000> : vector<1xf32>
    %43 = vector.multi_reduction <maximumf>, %42, %cst_15 [1, 2] : vector<1x9x128xf32> to vector<1xf32>
    %44 = vector.shape_cast %43 : vector<1xf32> to vector<1x1x1xf32>
    %45 = vector.extract %44[0, 0, 0] : f32 from vector<1x1x1xf32>
    %46 = vector.broadcast %45 : f32 to vector<1x1xf32>
    %47 = arith.maximumf %37, %46 : vector<1x1xf32>
    %c0_16 = arith.constant 0 : index
    %c0_17 = arith.constant 0 : index
    %48 = vector.load %arg6[%c0_16, %c0_17] : memref<1x1xf32, #tpu.memory_space<vmem>>, vector<1x1xf32>
    tpu.vector_store %arg6[%c0_16, %c0_17], %47 {strides = array<i32>} : memref<1x1xf32, #tpu.memory_space<vmem>>, vector<1x1xf32>,
    %c0_i32_18 = arith.constant 0 : i32
    %49 = arith.cmpi eq, %arg0, %c0_i32_18 : i32
    %50 = arith.extui %49 : i1 to i32
    %c0_i32_19 = arith.constant 0 : i32
    %51 = arith.cmpi ne, %50, %c0_i32_19 : i32
    scf.if %51 {
      %c0_20 = arith.constant 0 : index
      %c0_21 = arith.constant 0 : index
      %52 = vector.load %arg4[%c0_20, %c0_21] : memref<1x1xf32, #tpu.memory_space<vmem>>, vector<1x1xf32>
      %c0_22 = arith.constant 0 : index
      %c0_23 = arith.constant 0 : index
      %53 = vector.load %arg5[%c0_22, %c0_23] : memref<1x1xf32, #tpu.memory_space<vmem>>, vector<1x1xf32>
      %54 = arith.divf %52, %53 : vector<1x1xf32>
      %c0_24 = arith.constant 0 : index
      %c0_25 = arith.constant 0 : index
      %55 = vector.load %arg2[%c0_24, %c0_25] : memref<1x1xf32, #tpu.memory_space<vmem>>, vector<1x1xf32>
      tpu.vector_store %arg2[%c0_24, %c0_25], %54 {strides = array<i32>} : memref<1x1xf32, #tpu.memory_space<vmem>>, vector<1x1xf32>,
      %c0_26 = arith.constant 0 : index
      %c0_27 = arith.constant 0 : index
      %56 = vector.load %arg6[%c0_26, %c0_27] : memref<1x1xf32, #tpu.memory_space<vmem>>, vector<1x1xf32>
      %c0_28 = arith.constant 0 : index
      %c0_29 = arith.constant 0 : index
      %57 = vector.load %arg3[%c0_28, %c0_29] : memref<1x1xf32, #tpu.memory_space<vmem>>, vector<1x1xf32>
      tpu.vector_store %arg3[%c0_28, %c0_29], %56 {strides = array<i32>} : memref<1x1xf32, #tpu.memory_space<vmem>>, vector<1x1xf32>,
    } else {
    }
    return
  }
  func.func @transform_0(%arg0: i32) -> (i32, i32) {
    %c0_i32 = arith.constant 0 : i32
    %c0_i32_0 = arith.constant 0 : i32
    return %arg0, %c0_i32 : i32, i32
  }
  func.func @transform_1(%arg0: i32) -> (i32, i32) {
    %c0_i32 = arith.constant 0 : i32
    %c0_i32_0 = arith.constant 0 : i32
    %c0_i32_1 = arith.constant 0 : i32
    return %c0_i32, %c0_i32_0 : i32, i32
  }
  func.func @transform_2(%arg0: i32) -> (i32, i32) {
    %c0_i32 = arith.constant 0 : i32
    %c0_i32_0 = arith.constant 0 : i32
    %c0_i32_1 = arith.constant 0 : i32
    return %c0_i32, %c0_i32_0 : i32, i32
  }
}

</mosaic_0001>

<bundles_post_ra>
// kernel: tpu_custom_call.1
= control target key start
LH: loop header
LB: loop body
LE: loop exit
PB: predicated region body
PF: predicated region fallthrough
CT: control target
= control target key end

     0   :  { %8 = vsyncpa [#allocation6], 0  ;;  %s302_s0 = inlined_call_operand.hbm [shape: f32[9,128], index: 0, kind: input, shape index: {}]   ;;  %s303_s1 = inlined_call_operand.hbm [shape: f32[1,1], index: 1, kind: output, shape index: {0}]   ;;  %s304_s2 = inlined_call_operand.hbm [shape: f32[1,1], index: 2, kind: output, shape index: {1}]  }
   0x1   :  { %9 = vsyncpa [#allocation7], 0 }
   0x2   :  { %10 = vsyncpa [#allocation10], 0  ;;  %s241_s9 = smov [#allocation5]  }
   0x3   :  { %s16_s10 = sshll.u32 %s241_s9, 4  ;;  %s17_s10 = int_to_ptr.vmem [resolvable:$true] %s16_s10 }
   0x4   :  { %s183_s11 = scalar_lea.vmem %s17_s10, 256  ;;  %p188_p1 = scmp.lt.s32.totalorder %s17_s10, %s17_s10 }
   0x5   :  { %p184_p0 = scmp.ne.s32.totalorder %s17_s10, %s183_s11  ;;  %p189_p2 = scmp.lt.s32.totalorder %s183_s11, %s183_s11 }
   0x7   :  { %p190_p3 = por %p189_p2, %p188_p1 }
   0x9   :  { %p191_p4 = pnand %p190_p3, %p184_p0 }
   0xb   :  { %194 = shalt.err (!%p191_p4)
}
   0xc   :  { %s242_s12 = smov 128   ;;  %s243_s13 = smov 8  }
   0xd   :  { %22 = dma.hbm_to_vmem [thread:$0]  %s302_s0, 256, %s17_s10, [#allocation6], %s242_s12, %s242_s12, %s243_s13  }
   0xe   :  { %235 = dma.done.wait [#allocation6], 256  }
   0xf   :  { %236 = vsyncadd [#allocation6], 4294967040  ;;  %v36_v0 = vlaneseq  ;;  %v34_v7 = vld [vmem:[#allocation5] sm:$0xff]  ;;  %v35_v8 = vld [vmem:[#allocation5 + $0x8] sm:$0x1]  ;;  %vm60_vm5 = vcmask 1040384  }
  0x10   :  { %vm51_vm1 = vcmp.eq.f32.partialorder %v34_v7, %v34_v7  ;;  %vm52_vm2 = vcmp.eq.f32.partialorder %v35_v8, %v35_v8  ;;  %v56_v11 = vand.u32 2147483647, %v34_v7  ;;  %v57_v12 = vand.u32 2147483647, %v35_v8  ;;  %s245_s18 = smov [#allocation9]   ;;  %s246_s20 = smov [#allocation8]  }
  0x11   :  { %v37_v1 = vshrl.u32 %v36_v0, 7  ;;  %v40_v2 = vand.u32 127, %v36_v0  ;;  %169 = vtanh.f32 %v34_v7  ;;  %v244_v16 = vmov 0.0   ;;  %s142_s19 = sshll.u32 %s245_s18, 4  ;;  %s132_s21 = sshll.u32 %s246_s20, 4  ;;  %s143_s19 = int_to_ptr.vmem [resolvable:$true] %s142_s19  ;;  %s133_s21 = int_to_ptr.vmem [resolvable:$true] %s132_s21 }
  0x12   :  { %171 = vtanh.f32 %v35_v8  ;;  %vm30_vm7 = vcmask 0   ;;  %s195_s22 = scalar_lea.vmem %s143_s19, 16  ;;  %s199_s23 = scalar_lea.vmem %s143_s19, 32 }
  0x13   :  { %v38_v3 = vadd.s32 8, %v37_v1  ;;  %v45_v4 = vmul.u32 128, %v37_v1  ;;  %31 = vst.msk [vmem:[#allocation2] sm:$0x1] %vm30_vm7, %v244_v16  ;;  %32 = vst.msk [vmem:[#allocation3] sm:$0x1] %vm30_vm7, %v244_v16  ;;  %p196_p5 = scmp.ne.s32.totalorder %s143_s19, %s195_s22  ;;  %p200_p6 = scmp.lt.s32.totalorder %s143_s19, %s143_s19 }
  0x14   :  { %33 = vst.msk [vmem:[#allocation4] sm:$0x1] %vm30_vm7, %v244_v16  ;;  %p201_p7 = scmp.lt.s32.totalorder %s199_s23, %s195_s22 }
  0x15   :  { %v46_v5 = vmul.u32 128, %v38_v3  ;;  %v47_v6 = vadd.s32 %v45_v4, %v40_v2 }
  0x16   :  { %p202_p8 = por %p201_p7, %p200_p6 }
  0x17   :  { %v48_v9 = vadd.s32 %v46_v5, %v40_v2  ;;  %vm49_vm0 = vcmp.lt.s32.totalorder %v47_v6, 1152 }
  0x18   :  { %vm265_vm3 = vmand %vm49_vm0, %vm51_vm1  ;;  %p203_p9 = pnand %p202_p8, %p196_p5 }
  0x19   :  { %vm50_vm4 = vcmp.lt.s32.totalorder %v48_v9, 1152  ;;  %v58_v14 = vsel %vm265_vm3, %v56_v11, 0.0  ;;  %v155_v19 = vsel %vm265_vm3, 1.0, %v244_v16 }
  0x1a   :  { %vm269_vm6 = vmand %vm50_vm4, %vm52_vm2  ;;  %v55_v52 = vld [vmem:[#allocation2] sm:$0x1]  ;;  %v76_v55 = vld [vmem:[#allocation3] sm:$0x1] }
  0x1b   :  { %v59_v15 = vsel %vm269_vm6, %v57_v12, 0.0  ;;  %v156_v17 = vsel %vm269_vm6, 1.0, %v244_v16  ;;  %v95_v58 = vld [vmem:[#allocation4] sm:$0x1] }
  0x1c   :  { %v61_v18 = vsel %vm60_vm5, %v59_v15, 0.0  ;;  %v81_v20 = vsel %vm60_vm5, %v156_v17, 0.0 }
  0x1d   :  { %v62_v21 = vadd.f32 %v61_v18, %v58_v14  ;;  %v82_v22 = vadd.f32 %v155_v19, %v81_v20 }
  0x1e   :  { %v170_v23 = vpop.eup %169 }
  0x1f   :  { %63 = vadd.xlane.f32.xlu0 %v62_v21  ;;  %v172_v24 = vpop.eup %171  ;;  %v98_v25 = vand.u32 2147483647, %v170_v23 }
  0x20   :  { %v99_v26 = vand.u32 2147483647, %v172_v24 }
  0x21   :  { %v100_v27 = vsel %vm265_vm3, %v98_v25, 0.0 }
  0x22   :  { %v101_v28 = vsel %vm269_vm6, %v99_v26, 0.0 }
  0x23   :  { %83 = vadd.xlane.f32.xlu0 %v82_v22  ;;  %v102_v29 = vsel %vm60_vm5, %v101_v28, -inf }
  0x24   :  { %v103_v30 = vmax.f32 %v100_v27, %v102_v29 }
  0x26   :  { %104 = vmax.xlane.f32.xlu1 %v103_v30 }
  0xa8   :  { %v64_v31 = vpop.xlane.xlu0 %63 }
  0xa9   :  { %v65_v32 = vrot.slane %v64_v31, 4 }
  0xab   :  { %v66_v33 = vadd.f32 %v65_v32, %v64_v31 }
  0xac   :  { %v84_v34 = vpop.xlane.xlu0 %83 }
  0xad   :  { %v67_v35 = vrot.slane %v66_v33, 2  ;;  %v85_v36 = vrot.slane %v84_v34, 4 }
  0xaf   :  { %v86_v37 = vadd.f32 %v85_v36, %v84_v34  ;;  %v68_v38 = vadd.f32 %v67_v35, %v66_v33  ;;  %v105_v44 = vpop.xlane.xlu1 %104 }
  0xb0   :  { %v106_v45 = vrot.slane %v105_v44, 4 }
  0xb1   :  { %v87_v39 = vrot.slane %v86_v37, 2  ;;  %v69_v40 = vrot.slane %v68_v38, 1 }
  0xb2   :  { %v107_v47 = vmax.f32 %v105_v44, %v106_v45 }
  0xb3   :  { %v88_v41 = vadd.f32 %v87_v39, %v86_v37  ;;  %v70_v42 = vadd.f32 %v69_v40, %v68_v38 }
  0xb4   :  { %v108_v48 = vrot.slane %v107_v47, 2 }
  0xb5   :  { %157 = vpush %v70_v42  ;;  %v89_v43 = vrot.slane %v88_v41, 1 }
  0xb6   :  { %v109_v49 = vmax.f32 %v107_v47, %v108_v48 }
  0xb7   :  { %v90_v46 = vadd.f32 %v89_v43, %v88_v41 }
  0xb8   :  { %v110_v50 = vrot.slane %v109_v49, 1 }
  0xb9   :  { %159 = vpush %v90_v46 }
  0xba   :  { %v111_v51 = vmax.f32 %v109_v49, %v110_v50 }
  0xbc   :  { %161 = vpush %v111_v51 }
  0xe6   :  { %s158_s0 = spop %157 }
  0xe7   :  { %v72_v53 = vstv %s158_s0 }
  0xe8   :  { %v73_v54 = vadd.f32 %v72_v53, %v55_v52 }
  0xea   :  { %75 = vst.msk [vmem:[#allocation2] sm:$0x1] %vm30_vm7, %v73_v54  ;;  %s160_s16 = spop %159 }
  0xeb   :  { %v92_v56 = vstv %s160_s16 }
  0xec   :  { %v93_v57 = vadd.f32 %v92_v56, %v76_v55 }
  0xed   :  { %s162_s17 = spop %161 }
  0xee   :  { %94 = vst.msk [vmem:[#allocation3] sm:$0x1] %vm30_vm7, %v93_v57  ;;  %v113_v59 = vstv %s162_s17 }
  0xef   :  { %v114_v61 = vmax.f32 %v95_v58, %v113_v59 }
  0xf1   :  { %115 = vst.msk [vmem:[#allocation4] sm:$0x1] %vm30_vm7, %v114_v61 }
  0xf5   :  { %v120_v60 = vld [vmem:[#allocation3] sm:$0x1] }
  0xf6   :  { %173 = vrcp.f32 %v120_v60 }
  0xf8   :  { %v124_v62 = vld [vmem:[#allocation4] sm:$0x1] }
  0xf9   :  { %125 = vst.msk [vmem:[#allocation9] sm:$0x1] %vm30_vm7, %v124_v62 }
  0xfa   :  { %206 = shalt.err (!%p203_p9)
}
  0xfb   :  { %145 = dma.vmem_to_hbm [thread:$0]  %s143_s19, 16, %s304_s2, [#allocation10]   ;;  %v119_v0 = vld [vmem:[#allocation2] sm:$0x1] }
  0xfc   :  { %s215_s26 = scalar_lea.vmem %s133_s21, 16  ;;  %s219_s27 = scalar_lea.vmem %s133_s21, 32 }
  0xfd   :  { %p216_p10 = scmp.ne.s32.totalorder %s133_s21, %s215_s26  ;;  %p220_p11 = scmp.lt.s32.totalorder %s133_s21, %s133_s21 }
  0xfe   :  { %p221_p12 = scmp.lt.s32.totalorder %s219_s27, %s215_s26 }
 0x100   :  { %p222_p13 = por %p221_p12, %p220_p11 }
 0x102   :  { %p223_p0 = pnand %p222_p13, %p216_p10 }
 0x103   :  { %v174_v63 = vpop.eup %173 }
 0x104   :  { %v122_v1 = vmul.f32 %v174_v63, %v119_v0 }
 0x106   :  { %123 = vst.msk [vmem:[#allocation8] sm:$0x1] %vm30_vm7, %v122_v1 }
 0x107   :  { %226 = shalt.err (!%p223_p0)
}
 0x108   :  { %135 = dma.vmem_to_hbm [thread:$0]  %s133_s21, 16, %s303_s1, [#allocation7]  }
 0x109   :  { %237 = dma.done.wait [#allocation7], 16  }
 0x10a   :  { %238 = vsyncadd [#allocation7], 4294967280 }
 0x10b   :  { %239 = dma.done.wait [#allocation10], 16  }
 0x10c   :  { %240 = vsyncadd [#allocation10], 4294967280 }
 0x10d   :  { %152 = vsyncpa [#allocation6], 1 }
 0x10e   :  { %153 = vsyncpa [#allocation7], 1 }
 0x10f   :  { %154 = vsyncpa [#allocation10], 1 }

</bundles_post_ra>
